<compile_context>
chip_gen: v5e
topology: v5e:2x2
jax: 0.10.0
libtpu: 0.0.40
codegen_flags: <defaults>
</compile_context>

<pallas_src>
import jax
import jax.numpy as jnp
from jax.experimental import pallas as pl
from jax.experimental.pallas import tpu as pltpu


_LANES = 1280          # 2D-view row width: multiple of 128 (lane tile) and of 5 (angle alignment)
_ACC_ROWS = 8          # sublane height of the per-lane partial-sum accumulator
_BYTES_PER_ROW = _LANES * 4


def _cdiv(a, b):
    return -(-a // b)


def _round_up(x, m):
    return _cdiv(x, m) * m


# --------------------------------------------------------------------------- #
# Kernel
# --------------------------------------------------------------------------- #
def _mse_partial_kernel(pred_ref, gt_ref, mask_ref, acc_ref):
    """pred_ref / gt_ref: (block_rows, LANES) f32 tiles of the flattened stream.
    mask_ref: (1, LANES) f32, 1.0 on angle lanes (lane % 5 == 4), 0.0 elsewhere.
    acc_ref:  (1, ACC_ROWS, LANES) resident per-split partial-sum block."""
    inner = pl.program_id(1)

    @pl.when(inner == 0)
    def _init():
        acc_ref[...] = jnp.zeros_like(acc_ref)

    d = pred_ref[...] - gt_ref[...]                      # (block_rows, LANES), VPU
    ad = jnp.abs(d)
    ang = jnp.minimum(ad, 180.0 - ad)                    # 180-degree periodic distance

    # Blend the angle transform into the angle lanes with pure VPU arithmetic.
    m = jnp.broadcast_to(mask_ref[...], d.shape)         # sublane broadcast of (1, LANES)
    e = d + m * (ang - d)                                # m==1 -> ang, m==0 -> d
    e2 = e * e                                           # padded elements are exactly 0

    # Fold the block down to (ACC_ROWS, LANES) per-lane partials with pure VPU
    # adds on static (tile-aligned) sublane slices - no XLU reduce tree and no
    # serialized scalar accumulator per grid step.
    block_rows = e2.shape[0]
    part = e2[0:_ACC_ROWS, :]
    for r0 in range(_ACC_ROWS, block_rows, _ACC_ROWS):
        part = part + e2[r0:r0 + _ACC_ROWS, :]

    acc_ref[0] += part


# --------------------------------------------------------------------------- #
# Planning / wrapper
# --------------------------------------------------------------------------- #
def _vmem_capacity_bytes():
    try:
        return int(pltpu.get_tpu_info().vmem_capacity_bytes)
    except Exception:
        return 64 * 1024 * 1024  # conservative (v7x-sized) fallback


def _plan(total_elems, max_block_bytes=None):
    """Pick (n_split, blocks_per_split, block_rows, vmem_limit_bytes)."""
    vmem = _vmem_capacity_bytes()
    if max_block_bytes is None:
        # 2 input streams x double buffering => ~4 live block buffers; keep them
        # well under the per-generation VMEM capacity (64 MiB on v7x).
        max_block_bytes = min(8 << 20, max(1 << 20, vmem // 12))
    max_block_rows = max(_ACC_ROWS,
                         (max_block_bytes // _BYTES_PER_ROW) // _ACC_ROWS * _ACC_ROWS)

    rows_needed = _cdiv(total_elems, _LANES)
    # Two-way split feeds both v7x TensorCores; on 1-TC chips it is a free loop level.
    n_split = 2 if rows_needed >= 2 * _ACC_ROWS else 1
    per_split_rows = _round_up(_cdiv(rows_needed, n_split), _ACC_ROWS)
    block_rows = min(per_split_rows, max_block_rows)
    blocks_per_split = _cdiv(per_split_rows, block_rows)

    block_bytes = block_rows * _BYTES_PER_ROW
    need = 4 * block_bytes + (8 << 20)                   # pipeline buffers + slack
    vmem_limit = int(min(int(0.9 * vmem), max(32 << 20, need)))
    return n_split, blocks_per_split, block_rows, vmem_limit


def _to_2d(flat, r_total):
    padded = r_total * _LANES
    if padded != flat.shape[0]:
        flat = jnp.pad(flat, (0, padded - flat.shape[0]))  # zeros -> zero contribution
    return flat.reshape(r_total, _LANES)


def _loss_jax(predictions, ground_truths):
    """Plain-JAX path (small batches / single sample); identical semantics."""
    d = predictions - ground_truths
    ang = jnp.abs(d[:, 4])
    ang = jnp.minimum(ang, 180.0 - ang)
    ssq = jnp.sum(d[:, :4] ** 2) + jnp.sum(ang ** 2)
    return ssq / (5.0 * predictions.shape[0])


def custom_mse_loss_batched(predictions, ground_truths, *, use_pallas=None,
                            max_block_bytes=None):
    """mean_i CustomMSELoss()(predictions[i], ground_truths[i]) over (N, 5) inputs."""
    predictions = jnp.asarray(predictions, jnp.float32).reshape(-1, 5)
    ground_truths = jnp.asarray(ground_truths, jnp.float32).reshape(-1, 5)
    n = predictions.shape[0]

    if use_pallas is None:
        use_pallas = n >= 1024          # kernel only pays off once bandwidth-bound
    if not use_pallas:
        return _loss_jax(predictions, ground_truths)

    total = 5 * n
    n_split, blocks_per_split, block_rows, vmem_limit = _plan(total, max_block_bytes)
    r_total = n_split * blocks_per_split * block_rows

    pred2d = _to_2d(predictions.reshape(-1), r_total)
    gt2d = _to_2d(ground_truths.reshape(-1), r_total)

    # Angle-lane mask: row width is a multiple of 5, so flat%5 == lane%5 everywhere.
    lane = jnp.arange(_LANES, dtype=jnp.int32)
    angle_mask = (lane % 5 == 4).astype(jnp.float32).reshape(1, _LANES)

    data_spec = pl.BlockSpec((block_rows, _LANES),
                             lambda c, i: (c * blocks_per_split + i, 0))
    mask_spec = pl.BlockSpec((1, _LANES), lambda c, i: (0, 0))       # resident, fetched once
    acc_spec = pl.BlockSpec((1, _ACC_ROWS, _LANES), lambda c, i: (c, 0, 0))

    partials = pl.pallas_call(
        _mse_partial_kernel,
        out_shape=jax.ShapeDtypeStruct((n_split, _ACC_ROWS, _LANES), jnp.float32),
        grid_spec=pltpu.PrefetchScalarGridSpec(
            num_scalar_prefetch=0,
            grid=(n_split, blocks_per_split),
            in_specs=[data_spec, data_spec, mask_spec],
            out_specs=acc_spec,
        ),
        compiler_params=pltpu.CompilerParams(
            dimension_semantics=("parallel", "arbitrary"),
            vmem_limit_bytes=vmem_limit,
        ),
    )(pred2d, gt2d, angle_mask)

    # Tiny final cross-lane reduce + 1/(5N) scaling in the wrapper (keeps the
    # in-kernel reduction purely per-lane and correct under the 2-core split).
    return jnp.sum(partials) * (1.0 / (5.0 * n))


def custom_mse_loss(prediction, ground_truth):
    """Exact equivalent of CustomMSELoss.forward for a single [5] pair.

    A pallas_call launch for 5 floats is pure overhead, so this stays in plain
    JAX; use custom_mse_loss_batched for large batches."""
    prediction = jnp.asarray(prediction, jnp.float32).reshape(1, 5)
    ground_truth = jnp.asarray(ground_truth, jnp.float32).reshape(1, 5)
    return _loss_jax(prediction, ground_truth)


# --------------------------------------------------------------------------- #
# Reference + demo
# --------------------------------------------------------------------------- #
def _reference_single(p, g):
    """Plain-JAX port of the PyTorch module for one [5] sample."""
    diff = p[:4] - g[:4]
    ad = jnp.abs(p[4] - g[4])
    ad = jnp.minimum(ad, 180.0 - ad)
    combined = jnp.concatenate([diff, ad[None]], axis=0)
    return jnp.mean(combined ** 2)


if __name__ == "__main__":
    def make(k1, k2, n):
        return jnp.concatenate([
            jax.random.uniform(k1, (n, 4), jnp.float32, minval=-10.0, maxval=10.0),
            jax.random.uniform(k2, (n, 1), jnp.float32, minval=0.0, maxval=180.0),
        ], axis=1)

    kp1, kp2, kg1, kg2 = jax.random.split(jax.random.PRNGKey(0), 4)

    # Case 1: moderate batch (not a multiple of the row width -> exercises padding),
    # default device-sized blocks, single inner grid step per split.
    n1 = 12000
    preds1, gts1 = make(kp1, kp2, n1), make(kg1, kg2, n1)
    loss1 = jax.block_until_ready(custom_mse_loss_batched(preds1, gts1, use_pallas=True))
    ref1 = jnp.mean(jax.vmap(_reference_single)(preds1, gts1))
    assert jnp.allclose(loss1, ref1, rtol=1e-4, atol=1e-4), (loss1, ref1)

    # Case 2: artificially small block size to exercise the multi-block, two-way
    # split accumulation path (grid = (2, >1), resident accumulator across steps).
    n2 = 16000
    kq = jax.random.split(jax.random.PRNGKey(1), 4)
    preds2, gts2 = make(kq[0], kq[1], n2), make(kq[2], kq[3], n2)
    loss2 = jax.block_until_ready(
        custom_mse_loss_batched(preds2, gts2, use_pallas=True, max_block_bytes=64 * 1024))
    ref2 = jnp.mean(jax.vmap(_reference_single)(preds2, gts2))
    assert jnp.allclose(loss2, ref2, rtol=1e-4, atol=1e-4), (loss2, ref2)

    # Case 3: single-sample path (intentionally plain JAX - launch overhead).
    loss3 = jax.block_until_ready(custom_mse_loss(preds1[0], gts1[0]))
    ref3 = _reference_single(preds1[0], gts1[0])
    assert jnp.allclose(loss3, ref3, rtol=1e-5, atol=1e-5), (loss3, ref3)

    print("KERNEL_OK")
</pallas_src>

<mosaic_0001>
module attributes {stable_mosaic.version = 11 : i64} {
  func.func @_mse_partial_kernel(%arg0: i32, %arg1: i32, %arg2: memref<24x1280xf32, #tpu.memory_space<vmem>>, %arg3: memref<24x1280xf32, #tpu.memory_space<vmem>>, %arg4: memref<1x1280xf32, #tpu.memory_space<vmem>>, %arg5: memref<1x8x1280xf32, #tpu.memory_space<vmem>>) attributes {dimension_semantics = [#tpu.dimension_semantics<parallel>, #tpu.dimension_semantics<arbitrary>], iteration_bounds = array<i64: 2, 1>, scalar_prefetch = 0 : i64, scratch_operands = 0 : i64, tpu.core_type = #tpu.core_type<tc>, window_params = [{transform_indices = @transform_0, window_bounds = array<i64: 24, 1280>}, {transform_indices = @transform_1, window_bounds = array<i64: 24, 1280>}, {pipeline_mode = #tpu.pipeline_mode<synchronous>, transform_indices = @transform_2, window_bounds = array<i64: 1, 1280>}, {transform_indices = @transform_3, window_bounds = array<i64: 1, 8, 1280>}]} {
    %c0_i32 = arith.constant 0 : i32
    %0 = arith.cmpi eq, %arg1, %c0_i32 : i32
    %1 = arith.extui %0 : i1 to i32
    %c0_i32_0 = arith.constant 0 : i32
    %2 = arith.cmpi ne, %1, %c0_i32_0 : i32
    scf.if %2 {
      %cst_12 = arith.constant 0.000000e+00 : f32
      %28 = vector.broadcast %cst_12 : f32 to vector<1x8x1280xf32>
      %c0_13 = arith.constant 0 : index
      %c0_14 = arith.constant 0 : index
      %c0_15 = arith.constant 0 : index
      %29 = vector.load %arg5[%c0_13, %c0_14, %c0_15] : memref<1x8x1280xf32, #tpu.memory_space<vmem>>, vector<1x8x1280xf32>
      tpu.vector_store %arg5[%c0_13, %c0_14, %c0_15], %28 {strides = array<i32>} : memref<1x8x1280xf32, #tpu.memory_space<vmem>>, vector<1x8x1280xf32>,
    } else {
    }
    %c0 = arith.constant 0 : index
    %c0_1 = arith.constant 0 : index
    %3 = vector.load %arg2[%c0, %c0_1] : memref<24x1280xf32, #tpu.memory_space<vmem>>, vector<24x1280xf32>
    %c0_2 = arith.constant 0 : index
    %c0_3 = arith.constant 0 : index
    %4 = vector.load %arg3[%c0_2, %c0_3] : memref<24x1280xf32, #tpu.memory_space<vmem>>, vector<24x1280xf32>
    %5 = arith.subf %3, %4 : vector<24x1280xf32>
    %6 = math.absf %5 : vector<24x1280xf32>
    %cst = arith.constant 1.800000e+02 : f32
    %7 = vector.broadcast %cst : f32 to vector<24x1280xf32>
    %8 = arith.subf %7, %6 : vector<24x1280xf32>
    %9 = arith.minimumf %6, %8 : vector<24x1280xf32>
    %c0_4 = arith.constant 0 : index
    %c0_5 = arith.constant 0 : index
    %10 = vector.load %arg4[%c0_4, %c0_5] : memref<1x1280xf32, #tpu.memory_space<vmem>>, vector<1x1280xf32>
    %11 = vector.shape_cast %10 : vector<1x1280xf32> to vector<1x1280xf32>
    %12 = vector.broadcast %11 : vector<1x1280xf32> to vector<24x1280xf32>
    %13 = arith.subf %9, %5 : vector<24x1280xf32>
    %14 = arith.mulf %12, %13 : vector<24x1280xf32>
    %15 = arith.addf %5, %14 : vector<24x1280xf32>
    %16 = arith.mulf %15, %15 : vector<24x1280xf32>
    %17 = vector.extract_strided_slice %16 {offsets = [0, 0], sizes = [8, 1280], strides = [1, 1]} : vector<24x1280xf32> to vector<8x1280xf32>
    %18 = vector.extract_strided_slice %16 {offsets = [8, 0], sizes = [8, 1280], strides = [1, 1]} : vector<24x1280xf32> to vector<8x1280xf32>
    %19 = arith.addf %17, %18 : vector<8x1280xf32>
    %20 = vector.extract_strided_slice %16 {offsets = [16, 0], sizes = [8, 1280], strides = [1, 1]} : vector<24x1280xf32> to vector<8x1280xf32>
    %21 = arith.addf %19, %20 : vector<8x1280xf32>
    %c0_6 = arith.constant 0 : index
    %c0_7 = arith.constant 0 : index
    %c0_8 = arith.constant 0 : index
    %22 = vector.load %arg5[%c0_6, %c0_7, %c0_8] : memref<1x8x1280xf32, #tpu.memory_space<vmem>>, vector<1x8x1280xf32>
    %23 = vector.shape_cast %22 : vector<1x8x1280xf32> to vector<8x1280xf32>
    %24 = arith.addf %23, %21 : vector<8x1280xf32>
    %c0_9 = arith.constant 0 : index
    %c0_10 = arith.constant 0 : index
    %c0_11 = arith.constant 0 : index
    %25 = vector.load %arg5[%c0_9, %c0_10, %c0_11] : memref<1x8x1280xf32, #tpu.memory_space<vmem>>, vector<1x8x1280xf32>
    %26 = vector.shape_cast %25 : vector<1x8x1280xf32> to vector<8x1280xf32>
    %27 = vector.shape_cast %24 : vector<8x1280xf32> to vector<1x8x1280xf32>
    tpu.vector_store %arg5[%c0_9, %c0_10, %c0_11], %27 {strides = array<i32>} : memref<1x8x1280xf32, #tpu.memory_space<vmem>>, vector<1x8x1280xf32>,
    return
  }
  func.func @transform_0(%arg0: i32, %arg1: i32) -> (i32, i32) {
    %c1_i32 = arith.constant 1 : i32
    %0 = arith.muli %arg0, %c1_i32 : i32
    %1 = arith.addi %0, %arg1 : i32
    %c0_i32 = arith.constant 0 : i32
    %c0_i32_0 = arith.constant 0 : i32
    return %1, %c0_i32 : i32, i32
  }
  func.func @transform_1(%arg0: i32, %arg1: i32) -> (i32, i32) {
    %c1_i32 = arith.constant 1 : i32
    %0 = arith.muli %arg0, %c1_i32 : i32
    %1 = arith.addi %0, %arg1 : i32
    %c0_i32 = arith.constant 0 : i32
    %c0_i32_0 = arith.constant 0 : i32
    return %1, %c0_i32 : i32, i32
  }
  func.func @transform_2(%arg0: i32, %arg1: i32) -> (i32, i32) {
    %c0_i32 = arith.constant 0 : i32
    %c0_i32_0 = arith.constant 0 : i32
    %c0_i32_1 = arith.constant 0 : i32
    return %c0_i32, %c0_i32_0 : i32, i32
  }
  func.func @transform_3(%arg0: i32, %arg1: i32) -> (i32, i32, i32) {
    %c0_i32 = arith.constant 0 : i32
    %c0_i32_0 = arith.constant 0 : i32
    %c0_i32_1 = arith.constant 0 : i32
    return %arg0, %c0_i32, %c0_i32_0 : i32, i32, i32
  }
}

</mosaic_0001>

<bundles_post_ra>
// kernel: tpu_custom_call.1
= control target key start
LH: loop header
LB: loop body
LE: loop exit
PB: predicated region body
PF: predicated region fallthrough
CT: control target
= control target key end

     0   :  { %s1397_s0 = inlined_call_operand.hbm [shape: f32[48,1280], index: 0, kind: input, shape index: {}]   ;;  %s1398_s1 = inlined_call_operand.hbm [shape: f32[48,1280], index: 1, kind: input, shape index: {}]   ;;  %s1399_s2 = inlined_call_operand.hbm [shape: f32[1,1280], index: 2, kind: input, shape index: {}]   ;;  %s1400_s3 = inlined_call_operand.hbm [shape: f32[2,8,1280], index: 3, kind: output, shape index: {}]  }
   0x1   :  { %1404 = sst [smem:[#allocation17_spill]] %s1399_s2 }
   0x2   :  { %8 = vsyncpa [#allocation3], 0 }
   0x3   :  { %10 = vsyncpa [#allocation3 + $0x1], 0 }
   0x4   :  { %11 = vsyncpa [#allocation6], 0 }
   0x5   :  { %13 = vsyncpa [#allocation6 + $0x1], 0 }
   0x6   :  { %14 = vsyncpa [#allocation4], 0 }
   0x7   :  { %16 = vsyncpa [#allocation4 + $0x1], 0  ;;  %s1095_s12 = smov 0   ;;  %s1097_s13 = smov 0  }
   0x8   :  { %s1099_s14 = smov 0   ;;  %s1101_s15 = smov 0  }
   0x9   :  { %s1103_s16 = smov 0   ;;  %s1105_s17 = smov 0  }
   0xa LB: > { %1405 = sst [smem:[#allocation13_spill]] %s1058_s14  ;;  %s1126_s18 = sadd.s32 4294967295, %s1070_s17   ;;  %s1070_s17 = sphi %s1105_s17, %s22_s17   ;;  %s1066_s16 = sphi %s1103_s16, %s1422_s16   ;;  %s1062_s15 = sphi %s1101_s15, %s1418_s15   ;;  %s1058_s14 = sphi %s1099_s14, %s1417_s14   ;;  %s1054_s13 = sphi %s1097_s13, %s1421_s13   ;;  %s1050_s12 = sphi %s1095_s12, %s1420_s12  }
   0xb   : > { %1406 = sst [smem:[#allocation14_spill]] %s1066_s16  ;;  %s789_s19 = sadd.s32 4294967294, %s1070_s17  }
   0xc   : > { %s43_s20 = sadd.s32 1, %s1058_s14  ;;  %p50_p0 = scmp.ne.s32.totalorder %s1058_s14, %s1054_s13 }
   0xd   : > { %p51_p1 = scmp.eq.s32.totalorder %s1070_s17, 0  ;;  %p56_p2 = scmp.ne.s32.totalorder %s1054_s13, %s1050_s12 }
   0xe   : > { %p57_p3 = scmp.eq.s32.totalorder %s1126_s18, 0  ;;  %p129_p4 = scmp.eq.s32.totalorder %s1126_s18, 1 }
   0xf   : > { %p1137_p5 = por %p51_p1, %p50_p0  ;;  %p135_p6 = scmp.eq.s32.totalorder %s789_s19, 1 }
  0x10   : > { %p1143_p7 = por %p57_p3, %p56_p2  ;;  %p1147_p8 = por %p129_p4, %p50_p0 }
  0x11   : > { %p1151_p9 = por %p135_p6, %p56_p2  ;;  %p790_p10 = scmp.ge.s32.totalorder %s1070_s17, 1 }
  0x12   : > { %p142_p11 = scmp.lt.s32.totalorder %s1070_s17, 3  ;;  %s1411_s2 = sld [smem:[#allocation17_spill]] }
  0x13   : > { %s1072_s29 = smov [#allocation7]   ;;  %p792_p13 = scmp.ge.s32.totalorder %s1070_s17, 2 }
  0x14   : > { %p1160_p12 = pnand %p790_p10, %p142_p11  ;;  %s156_s30 = sshll.u32 %s1072_s29, 4  ;;  %s157_s30 = int_to_ptr.vmem [resolvable:$true] %s156_s30 }
  0x15   : > { %p833_p1 = scmp.lt.s32.totalorder %s1070_s17, 2  ;;  %s34_s5 = sadd.s32 1, %s1066_s16 }
  0x16   : > { %p817_p0 = pneg %p1160_p12  ;;  %p36_p6 = scmp.ge.s32.totalorder %s34_s5, 2 }
  0x17   : > { %p1172_p4 = pnand %p833_p1, %p1137_p5  ;;  %s167_s6 = sand.u32 1, %s1058_s14  }
  0x18   : > { %s154_s27 = sshll.u32 %s1411_s2, 4  ;;  %p818_p2 = pnand %p817_p0, %p57_p3  ;;  %s155_s27 = int_to_ptr.hbm [resolvable:$true] %s154_s27 }
  0x19   : > { %s1424_s5 = smov (%p36_p6, %s34_s5), 0  ;;  %s800_s7 = smul.u32 240, %s167_s6 }
  0x1a   : > { %820 = dma.hbm_to_vmem [thread:$0]  (!%p818_p2), %s155_s27, 160, %s157_s30, [#allocation6]  }
  0x1b   : > { %1414 = sst [smem:[#allocation15_spill]] %s1424_s5  ;;  %s40_s8 = ssub.s32 %s1066_s16, %s1424_s5 }
  0x1c   : > { %p41_p10 = scmp.eq.s32.totalorder %s40_s8, 0  ;;  %s834_s9 = smul.u32 240, %s1066_s16 }
  0x1d   : > { %s171_s10 = scalar_lea.vmem [#allocation2], %s800_s7  ;;  %s168_s29 = scalar_lea.sflag [#allocation3], %s167_s6 }
  0x1e   : > { %s181_s11 = sshll.u32 %s171_s10, 4  ;;  %s178_s26 = scalar_lea.hbm %s1397_s0, %s834_s9  ;;  %s182_s11 = int_to_ptr.vmem [resolvable:$true] %s181_s11 }
  0x1f   : > { %s1186_s19 = scalar_select %p41_p10, %s1058_s14, %s43_s20  }
  0x20   : > { %s179_s27 = sshll.u32 %s178_s26, 4  ;;  %s1073_s30 = smov 1280   ;;  %s180_s27 = int_to_ptr.hbm [resolvable:$true] %s179_s27 }
  0x21   : > { %1415 = sst [smem:[#allocation16_spill]] %s1186_s19  ;;  %s1074_s2 = smov 80  }
  0x22   : > { %824 = dma.hbm_to_vmem [thread:$0]  (!%p1172_p4), %s180_s27, 3840, %s182_s11, %s168_s29, %s1073_s30, %s1073_s30, %s1074_s2  }
  0x23   : > { %s191_s8 = sand.u32 1, %s1070_s17   ;;  %s202_s10 = scalar_lea.hbm %s1398_s1, %s834_s9 }
  0x24   : > { %s203_s20 = sshll.u32 %s202_s10, 4  ;;  %s195_s19 = scalar_lea.vmem [#allocation5], %s800_s7  ;;  %s204_s20 = int_to_ptr.hbm [resolvable:$true] %s203_s20 }
  0x25   : > { %s205_s14 = sshll.u32 %s195_s19, 4  ;;  %s192_s21 = scalar_lea.sflag [#allocation6], %s191_s8  ;;  %s206_s14 = int_to_ptr.vmem [resolvable:$true] %s205_s14 }
  0x26   : > { %827 = dma.hbm_to_vmem [thread:$0]  (!%p1172_p4), %s204_s20, 3840, %s206_s14, %s192_s21, %s1073_s30, %s1073_s30, %s1074_s2  }
  0x27   : > { %217 = sbr.rel (%p1160_p12) target bundleno = 134 (0x86), region = 32  ;;  %s1202_s6 = sand.u32 (!%p1160_p12), 1, %s1054_s13  }
  0x28   : > { %s804_s11 = smul.u32 (!%p1160_p12), 240, %s1202_s6  ;;  %s220_s16 = scalar_lea.sflag (!%p1160_p12), [#allocation3], %s1202_s6 }
  0x2a   : > { %s1206_s5 = scalar_lea.vmem (!%p1160_p12), [#allocation2], %s804_s11 }
  0x2c   : > { %1033 = dma.done.wait (%p1143_p7), %s220_s16, 3840  }
  0x2d   : > { %1035 = vsyncadd (%p1143_p7), %s220_s16, 4294963456  ;;  %s229_s2 = sand.u32 1, %s1126_s18   ;;  %s1213_s28 = scalar_lea.vmem [#allocation5], %s804_s11 }
  0x2e   : > { %s230_s14 = scalar_lea.sflag [#allocation6], %s229_s2 }
  0x2f   : > { %1037 = dma.done.wait (%p1143_p7), %s230_s14, 3840  }
  0x30   : > { %1039 = vsyncadd (%p1143_p7), %s230_s14, 4294963456 }
  0x31   : > { %1041 = dma.done.wait (%p57_p3), [#allocation6], 160  }
  0x32   : > { %1043 = vsyncadd (%p57_p3), [#allocation6], 4294967136  ;;  %v285_v0 = vld [vmem:[%s1206_s5] sm:$0xff]  ;;  %v295_v1 = vld [vmem:[%s1206_s5 + $0x50] sm:$0xff]  ;;  %s805_s18 = smul.u32 80, %s1202_s6  ;;  %s1000_s10 = scalar_lea.hbm %s1400_s3, 160 }
  0x33   : > { %v305_v2 = vld [vmem:[%s1206_s5 + $0xa0] sm:$0xff]  ;;  %v325_v4 = vld [vmem:[%s1213_s28 + $0x50] sm:$0xff]  ;;  %v286_v10 = vld [vmem:[%s1206_s5 + $0x8] sm:$0xff]  ;;  %s806_s4 = smul.u32 80, %s1062_s15  ;;  %s660_s15 = scalar_lea.sflag [#allocation4], %s1202_s6 }
  0x34   : > { %v315_v3 = vld [vmem:[%s1213_s28] sm:$0xff]  ;;  %v355_v7 = vsub.f32 %v295_v1, %v325_v4  ;;  %v296_v11 = vld [vmem:[%s1206_s5 + $0x58] sm:$0xff]  ;;  %v306_v13 = vld [vmem:[%s1206_s5 + $0xa8] sm:$0xff]  ;;  %s1290_s22 = scalar_lea.vmem [#allocation8], %s805_s18 }
  0x35   : > { %v335_v5 = vld [vmem:[%s1213_s28 + $0xa0] sm:$0xff]  ;;  %v345_v6 = vsub.f32 %v285_v0, %v315_v3  ;;  %v316_v14 = vld [vmem:[%s1213_s28 + $0x8] sm:$0xff]  ;;  %v326_v15 = vld [vmem:[%s1213_s28 + $0x58] sm:$0xff]  ;;  %s671_s19 = scalar_lea.hbm %s1400_s3, %s806_s4  ;;  %s673_s25 = sshll.u32 %s1290_s22, 4  ;;  %s674_s25 = int_to_ptr.vmem [resolvable:$true] %s673_s25 }
  0x36   : > { %v365_v8 = vsub.f32 %v305_v2, %v335_v5  ;;  %v1229_v9 = vld [vmem:[#allocation7] sm:$0xff]  ;;  %v385_v18 = vand.u32 2147483647, %v355_v7  ;;  %v346_v20 = vsub.f32 %v286_v10, %v316_v14  ;;  %v336_v21 = vld [vmem:[%s1213_s28 + $0xa8] sm:$0xff]  ;;  %v356_v22 = vsub.f32 %v296_v11, %v326_v15  ;;  %v318_v14 = vld [vmem:[%s1213_s28 + $0x18] sm:$0xff]  ;;  %s675_s26 = sshll.u32 %s671_s19, 4  ;;  %s676_s26 = int_to_ptr.hbm [resolvable:$true] %s675_s26 }
  0x37   : > { %v469_v12 = vperm.slane %v1229_v9, 0  ;;  %v470_v16 = vperm.slane %v1229_v9, 1  ;;  %v375_v17 = vand.u32 2147483647, %v345_v6  ;;  %v287_v23 = vld [vmem:[%s1206_s5 + $0x10] sm:$0xff]  ;;  %v297_v24 = vld [vmem:[%s1206_s5 + $0x60] sm:$0xff]  ;;  %v366_v31 = vsub.f32 %v306_v13, %v336_v21 }
  0x38   : > { %v395_v19 = vand.u32 2147483647, %v365_v8  ;;  %v1242_v25 = vperm.slane %v1229_v9, 2  ;;  %v1245_v26 = vperm.slane %v1229_v9, 3  ;;  %v1248_v27 = vperm.slane %v1229_v9, 4  ;;  %v307_v32 = vld [vmem:[%s1206_s5 + $0xb0] sm:$0xff] }
  0x39   : > { %v405_v28 = vsub.f32 180.0, %v375_v17  ;;  %v415_v29 = vsub.f32 180.0, %v385_v18  ;;  %v317_v33 = vld [vmem:[%s1213_s28 + $0x10] sm:$0xff]  ;;  %v327_v34 = vld [vmem:[%s1213_s28 + $0x60] sm:$0xff]  ;;  %v376_v35 = vand.u32 2147483647, %v346_v20 }
  0x3a   : > { %v425_v30 = vsub.f32 180.0, %v395_v19  ;;  %v386_v36 = vand.u32 2147483647, %v356_v22  ;;  %v337_v37 = vld [vmem:[%s1213_s28 + $0xb0] sm:$0xff]  ;;  %v1254_v38 = vsub.f32 %v287_v23, %v317_v33  ;;  %v1256_v39 = vsub.f32 %v297_v24, %v327_v34  ;;  %v288_v13 = vld [vmem:[%s1206_s5 + $0x18] sm:$0xff]  ;;  %v298_v21 = vld [vmem:[%s1206_s5 + $0x68] sm:$0xff] }
  0x3b   : > { %v435_v40 = vmin.f32 %v375_v17, %v405_v28  ;;  %v445_v41 = vmin.f32 %v385_v18, %v415_v29  ;;  %v396_v43 = vand.u32 2147483647, %v366_v31  ;;  %v406_v44 = vsub.f32 180.0, %v376_v35  ;;  %v328_v23 = vld [vmem:[%s1213_s28 + $0x68] sm:$0xff]  ;;  %s994_s27 = sshra.s32 %s676_s26, 4  ;;  %s995_s27 = int_to_ptr.hbm [resolvable:$true] %s994_s27 }
  0x3c   : > { %v455_v42 = vmin.f32 %v395_v19, %v425_v30  ;;  %v416_v45 = vsub.f32 180.0, %v386_v36  ;;  %v1258_v46 = vsub.f32 %v307_v32, %v337_v37  ;;  %v377_v47 = vand.u32 2147483647, %v1254_v38  ;;  %v308_v30 = vld [vmem:[%s1206_s5 + $0xb8] sm:$0xff]  ;;  %s996_s29 = scalar_lea.hbm %s995_s27, 80  ;;  %p1001_p11 = scmp.lt.s32.totalorder %s995_s27, %s1400_s3 }
  0x3d   : > { %v489_v48 = vsub.f32 %v435_v40, %v345_v6  ;;  %v499_v49 = vsub.f32 %v445_v41, %v355_v7  ;;  %v426_v51 = vsub.f32 180.0, %v396_v43  ;;  %v436_v52 = vmin.f32 %v376_v35, %v406_v44  ;;  %v338_v32 = vld [vmem:[%s1213_s28 + $0xb8] sm:$0xff]  ;;  %v289_v44 = vld [vmem:[%s1206_s5 + $0x20] sm:$0xff]  ;;  %p997_p3 = scmp.ne.s32.totalorder %s995_s27, %s996_s29  ;;  %p1002_p12 = scmp.lt.s32.totalorder %s1000_s10, %s996_s29 }
  0x3e   : > { %v509_v50 = vsub.f32 %v455_v42, %v365_v8  ;;  %v446_v53 = vmin.f32 %v386_v36, %v416_v45  ;;  %v387_v54 = vand.u32 2147483647, %v1256_v39  ;;  %v397_v55 = vand.u32 2147483647, %v1258_v46  ;;  %v319_v45 = vld [vmem:[%s1213_s28 + $0x20] sm:$0xff] }
  0x3f   : > { %v519_v56 = vmul.f32 %v489_v48, %v469_v12  ;;  %v529_v57 = vmul.f32 %v499_v49, %v469_v12  ;;  %v456_v59 = vmin.f32 %v396_v43, %v426_v51  ;;  %v490_v60 = vsub.f32 %v436_v52, %v346_v20  ;;  %p998_p5 = pnand %p997_p3, %p1147_p8  ;;  %p1003_p0 = por %p1002_p12, %p1001_p11 }
  0x40   : > { %v539_v58 = vmul.f32 %v509_v50, %v469_v12  ;;  %v500_v61 = vsub.f32 %v446_v53, %v356_v22  ;;  %v407_v62 = vsub.f32 180.0, %v377_v47  ;;  %v417_v63 = vsub.f32 180.0, %v387_v54  ;;  %v299_v50 = vld [vmem:[%s1206_s5 + $0x70] sm:$0xff] }
  0x41   : > { %v549_v0 = vadd.f32 %v519_v56, %v345_v6  ;;  %v559_v1 = vadd.f32 %v529_v57, %v355_v7  ;;  %v510_v3 = vsub.f32 %v456_v59, %v366_v31  ;;  %v520_v4 = vmul.f32 %v490_v60, %v470_v16  ;;  %v329_v56 = vld [vmem:[%s1213_s28 + $0x70] sm:$0xff]  ;;  %v290_v60 = vld [vmem:[%s1206_s5 + $0x28] sm:$0xff]  ;;  %p999_p7 = pneg %p998_p5 }
  0x42   : > { %v569_v2 = vadd.f32 %v539_v58, %v365_v8  ;;  %v530_v5 = vmul.f32 %v500_v61, %v470_v16  ;;  %v427_v10 = vsub.f32 180.0, %v397_v55  ;;  %v437_v11 = vmin.f32 %v377_v47, %v407_v62 }
  0x43   : > { %v579_v12 = vmul.f32 %v549_v0, %v549_v0  ;;  %v589_v15 = vmul.f32 %v559_v1, %v559_v1  ;;  %v540_v18 = vmul.f32 %v510_v3, %v470_v16  ;;  %v550_v19 = vadd.f32 %v520_v4, %v346_v20  ;;  %v300_v3 = vld [vmem:[%s1206_s5 + $0x78] sm:$0xff]  ;;  %p1004_p1 = pnand %p1003_p0, %p999_p7 }
  0x44   : > { %v599_v17 = vmul.f32 %v569_v2, %v569_v2  ;;  %v560_v6 = vadd.f32 %v530_v5, %v356_v22  ;;  %v447_v7 = vmin.f32 %v387_v54, %v417_v63  ;;  %v457_v8 = vmin.f32 %v397_v55, %v427_v10  ;;  %v309_v55 = vld [vmem:[%s1206_s5 + $0xc0] sm:$0xff]  ;;  %v330_v4 = vld [vmem:[%s1213_s28 + $0x78] sm:$0xff] }
  0x45   : > { %v609_v24 = vadd.f32 %v589_v15, %v579_v12  ;;  %v570_v28 = vadd.f32 %v540_v18, %v366_v31  ;;  %v491_v29 = vsub.f32 %v437_v11, %v1254_v38  ;;  %v1271_v33 = vsub.f32 %v288_v13, %v318_v14  ;;  %v310_v18 = vld [vmem:[%s1206_s5 + $0xc8] sm:$0xff] }
  0x46   : > { %v580_v34 = vmul.f32 %v550_v19, %v550_v19  ;;  %v590_v35 = vmul.f32 %v560_v6, %v560_v6  ;;  %v501_v16 = vsub.f32 %v447_v7, %v1256_v39  ;;  %v511_v20 = vsub.f32 %v457_v8, %v1258_v46  ;;  %v340_v19 = vld [vmem:[%s1213_s28 + $0xc8] sm:$0xff] }
  0x47   : > { %v619_v22 = vadd.f32 %v609_v24, %v599_v17  ;;  %v600_v36 = vmul.f32 %v570_v28, %v570_v28  ;;  %v521_v37 = vmul.f32 %v491_v29, %v1242_v25  ;;  %v358_v31 = vsub.f32 %v298_v21, %v328_v23 }
  0x48   : > { %v610_v40 = vadd.f32 %v590_v35, %v580_v34  ;;  %v531_v41 = vmul.f32 %v501_v16, %v1242_v25  ;;  %v541_v42 = vmul.f32 %v511_v20, %v1242_v25  ;;  %v368_v43 = vsub.f32 %v308_v30, %v338_v32  ;;  %v339_v25 = vld [vmem:[%s1213_s28 + $0xc0] sm:$0xff] }
  0x49   : > { %v551_v47 = vadd.f32 %v521_v37, %v1254_v38  ;;  %v378_v48 = vand.u32 2147483647, %v1271_v33  ;;  %v388_v49 = vand.u32 2147483647, %v358_v31  ;;  %649 = vst [vmem:[%s1290_s22] sm:$0xff] %v619_v22  ;;  %v349_v59 = vsub.f32 %v289_v44, %v319_v45 }
  0x4a   : > { %v620_v51 = vadd.f32 %v610_v40, %v600_v36  ;;  %v561_v52 = vadd.f32 %v531_v41, %v1256_v39  ;;  %v571_v53 = vadd.f32 %v541_v42, %v1258_v46  ;;  %v398_v54 = vand.u32 2147483647, %v368_v43  ;;  %v320_v39 = vld [vmem:[%s1213_s28 + $0x28] sm:$0xff] }
  0x4b   : > { %v581_v38 = vmul.f32 %v551_v47, %v551_v47  ;;  %v408_v57 = vsub.f32 180.0, %v378_v48  ;;  %v418_v58 = vsub.f32 180.0, %v388_v49  ;;  %v359_v1 = vsub.f32 %v299_v50, %v329_v56 }
  0x4c   : > { %v591_v61 = vmul.f32 %v561_v52, %v561_v52  ;;  %v601_v46 = vmul.f32 %v571_v53, %v571_v53  ;;  %v428_v62 = vsub.f32 180.0, %v398_v54  ;;  %v369_v2 = vsub.f32 %v309_v55, %v339_v25  ;;  %650 = vst [vmem:[%s1290_s22 + $0x8] sm:$0xff] %v620_v51  ;;  %v291_v52 = vld [vmem:[%s1206_s5 + $0x30] sm:$0xff] }
  0x4d   : > { %v438_v63 = vmin.f32 %v378_v48, %v408_v57  ;;  %v448_v0 = vmin.f32 %v388_v49, %v418_v58  ;;  %v379_v11 = vand.u32 2147483647, %v349_v59  ;;  %v1298_v13 = vsub.f32 %v290_v60, %v320_v39  ;;  %v321_v53 = vld [vmem:[%s1213_s28 + $0x30] sm:$0xff] }
  0x4e   : > { %v611_v5 = vadd.f32 %v591_v61, %v581_v38  ;;  %v458_v10 = vmin.f32 %v398_v54, %v428_v62  ;;  %v389_v15 = vand.u32 2147483647, %v359_v1  ;;  %v399_v17 = vand.u32 2147483647, %v369_v2  ;;  %v301_v38 = vld [vmem:[%s1206_s5 + $0x80] sm:$0xff]  ;;  %v311_v61 = vld [vmem:[%s1206_s5 + $0xd0] sm:$0xff] }
  0x4f   : > { %v492_v14 = vsub.f32 %v438_v63, %v1271_v33  ;;  %v502_v12 = vsub.f32 %v448_v0, %v358_v31  ;;  %v409_v8 = vsub.f32 180.0, %v379_v11  ;;  %v1303_v21 = vsub.f32 %v300_v3, %v330_v4  ;;  %v341_v62 = vld [vmem:[%s1213_s28 + $0xd0] sm:$0xff] }
  0x50   : > { %v621_v6 = vadd.f32 %v611_v5, %v601_v46  ;;  %v512_v7 = vsub.f32 %v458_v10, %v368_v43  ;;  %v419_v28 = vsub.f32 180.0, %v389_v15  ;;  %v429_v29 = vsub.f32 180.0, %v399_v17  ;;  %v331_v46 = vld [vmem:[%s1213_s28 + $0x80] sm:$0xff] }
  0x51   : > { %v522_v23 = vmul.f32 %v492_v14, %v1245_v26  ;;  %v532_v24 = vmul.f32 %v502_v12, %v1245_v26  ;;  %v439_v32 = vmin.f32 %v379_v11, %v409_v8  ;;  %v1308_v34 = vsub.f32 %v310_v18, %v340_v19  ;;  %v292_v14 = vld [vmem:[%s1206_s5 + $0x38] sm:$0xff] }
  0x52   : > { %v542_v30 = vmul.f32 %v512_v7, %v1245_v26  ;;  %v449_v20 = vmin.f32 %v389_v15, %v419_v28  ;;  %v459_v22 = vmin.f32 %v399_v17, %v429_v29  ;;  %651 = vst [vmem:[%s1290_s22 + $0x10] sm:$0xff] %v621_v6  ;;  %v380_v40 = vand.u32 2147483647, %v1298_v13  ;;  %v322_v12 = vld [vmem:[%s1213_s28 + $0x38] sm:$0xff]  ;;  %v332_v28 = vld [vmem:[%s1213_s28 + $0x88] sm:$0xff] }
  0x53   : > { %v552_v35 = vadd.f32 %v522_v23, %v1271_v33  ;;  %v562_v16 = vadd.f32 %v532_v24, %v358_v31  ;;  %v493_v37 = vsub.f32 %v439_v32, %v349_v59  ;;  %v390_v41 = vand.u32 2147483647, %v1303_v21  ;;  %v302_v24 = vld [vmem:[%s1206_s5 + $0x88] sm:$0xff] }
  0x54   : > { %v572_v36 = vadd.f32 %v542_v30, %v368_v43  ;;  %v503_v26 = vsub.f32 %v449_v20, %v359_v1  ;;  %v513_v45 = vsub.f32 %v459_v22, %v369_v2  ;;  %v400_v31 = vand.u32 2147483647, %v1308_v34 }
  0x55   : > { %v582_v42 = vmul.f32 %v552_v35, %v552_v35  ;;  %v592_v44 = vmul.f32 %v562_v16, %v562_v16  ;;  %v523_v33 = vmul.f32 %v493_v37, %v1248_v27  ;;  %v410_v48 = vsub.f32 180.0, %v380_v40  ;;  %v312_v35 = vld [vmem:[%s1206_s5 + $0xd8] sm:$0xff] }
  0x56   : > { %v602_v47 = vmul.f32 %v572_v36, %v572_v36  ;;  %v533_v49 = vmul.f32 %v503_v26, %v1248_v27  ;;  %v543_v50 = vmul.f32 %v513_v45, %v1248_v27  ;;  %v420_v51 = vsub.f32 180.0, %v390_v41  ;;  %v342_v16 = vld [vmem:[%s1213_s28 + $0xd8] sm:$0xff] }
  0x57   : > { %v612_v43 = vadd.f32 %v592_v44, %v582_v42  ;;  %v553_v54 = vadd.f32 %v523_v33, %v349_v59  ;;  %v430_v55 = vsub.f32 180.0, %v400_v31  ;;  %v440_v56 = vmin.f32 %v380_v40, %v410_v48 }
  0x58   : > { %v474_v25 = vperm.slane %v1229_v9, 5  ;;  %v563_v58 = vadd.f32 %v533_v49, %v359_v1  ;;  %v573_v60 = vadd.f32 %v543_v50, %v369_v2  ;;  %v450_v39 = vmin.f32 %v390_v41, %v420_v51 }
  0x59   : > { %v622_v57 = vadd.f32 %v612_v43, %v602_v47  ;;  %v583_v27 = vmul.f32 %v553_v54, %v553_v54  ;;  %v460_v63 = vmin.f32 %v400_v31, %v430_v55  ;;  %v494_v0 = vsub.f32 %v440_v56, %v1298_v13  ;;  %v323_v43 = vld [vmem:[%s1213_s28 + $0x40] sm:$0xff] }
  0x5a   : > { %v351_v59 = vsub.f32 %v291_v52, %v321_v53  ;;  %v593_v3 = vmul.f32 %v563_v58, %v563_v58  ;;  %v603_v4 = vmul.f32 %v573_v60, %v573_v60  ;;  %v504_v5 = vsub.f32 %v450_v39, %v1303_v21  ;;  %v313_v39 = vld [vmem:[%s1206_s5 + $0xe0] sm:$0xff] }
  0x5b   : > { %v514_v1 = vsub.f32 %v460_v63, %v1308_v34  ;;  %v524_v2 = vmul.f32 %v494_v0, %v474_v25  ;;  %v361_v10 = vsub.f32 %v301_v38, %v331_v46  ;;  %v371_v11 = vsub.f32 %v311_v61, %v341_v62  ;;  %652 = vst [vmem:[%s1290_s22 + $0x18] sm:$0xff] %v622_v57  ;;  %v333_v38 = vld [vmem:[%s1213_s28 + $0x90] sm:$0xff]  ;;  %v343_v61 = vld [vmem:[%s1213_s28 + $0xe0] sm:$0xff] }
  0x5c   : > { %v613_v15 = vadd.f32 %v593_v3, %v583_v27  ;;  %v534_v17 = vmul.f32 %v504_v5, %v474_v25  ;;  %v381_v18 = vand.u32 2147483647, %v351_v59  ;;  %v475_v19 = vperm.slane %v1229_v9, 6 }
  0x5d   : > { %v544_v6 = vmul.f32 %v514_v1, %v474_v25  ;;  %v554_v7 = vadd.f32 %v524_v2, %v1298_v13  ;;  %v391_v8 = vand.u32 2147483647, %v361_v10  ;;  %v401_v23 = vand.u32 2147483647, %v371_v11  ;;  %v303_v25 = vld [vmem:[%s1206_s5 + $0x90] sm:$0xff] }
  0x5e   : > { %v623_v29 = vadd.f32 %v613_v15, %v603_v4  ;;  %v564_v30 = vadd.f32 %v534_v17, %v1303_v21  ;;  %v411_v32 = vsub.f32 180.0, %v381_v18  ;;  %v352_v20 = vsub.f32 %v292_v14, %v322_v12  ;;  %v293_v21 = vld [vmem:[%s1206_s5 + $0x40] sm:$0xff]  ;;  %v466_v12 = vld [vmem:[#allocation7 + $0x8] sm:$0x3] }
  0x5f   : > { %v574_v22 = vadd.f32 %v544_v6, %v1308_v34  ;;  %v584_v36 = vmul.f32 %v554_v7, %v554_v7  ;;  %v421_v37 = vsub.f32 180.0, %v391_v8  ;;  %v431_v40 = vsub.f32 180.0, %v401_v23  ;;  %v294_v7 = vld [vmem:[%s1206_s5 + $0x48] sm:$0xff] }
  0x60   : > { %v594_v13 = vmul.f32 %v564_v30, %v564_v30  ;;  %v441_v41 = vmin.f32 %v381_v18, %v411_v32  ;;  %v362_v42 = vsub.f32 %v302_v24, %v332_v28  ;;  %v372_v47 = vsub.f32 %v312_v35, %v342_v16  ;;  %653 = vst [vmem:[%s1290_s22 + $0x20] sm:$0xff] %v623_v29 }
  0x61   : > { %v604_v44 = vmul.f32 %v574_v22, %v574_v22  ;;  %v451_v26 = vmin.f32 %v391_v8, %v421_v37  ;;  %v461_v45 = vmin.f32 %v401_v23, %v431_v40  ;;  %v382_v48 = vand.u32 2147483647, %v352_v20  ;;  %v324_v8 = vld [vmem:[%s1213_s28 + $0x48] sm:$0xff]  ;;  %v304_v22 = vld [vmem:[%s1206_s5 + $0x98] sm:$0xff] }
  0x62   : > { %v614_v33 = vadd.f32 %v594_v13, %v584_v36  ;;  %v495_v31 = vsub.f32 %v441_v41, %v351_v59  ;;  %v392_v34 = vand.u32 2147483647, %v362_v42  ;;  %v402_v51 = vand.u32 2147483647, %v372_v47  ;;  %v334_v36 = vld [vmem:[%s1213_s28 + $0x98] sm:$0xff]  ;;  %v314_v41 = vld [vmem:[%s1206_s5 + $0xe8] sm:$0xff] }
  0x63   : > { %v505_v49 = vsub.f32 %v451_v26, %v361_v10  ;;  %v515_v50 = vsub.f32 %v461_v45, %v371_v11  ;;  %v476_v52 = vperm.slane %v1229_v9, 7  ;;  %v412_v55 = vsub.f32 180.0, %v382_v48 }
  0x64   : > { %v624_v53 = vadd.f32 %v614_v33, %v604_v44  ;;  %v525_v54 = vmul.f32 %v495_v31, %v475_v19  ;;  %v422_v56 = vsub.f32 180.0, %v392_v34  ;;  %v432_v60 = vsub.f32 180.0, %v402_v51  ;;  %v344_v44 = vld [vmem:[%s1213_s28 + $0xe8] sm:$0xff] }
  0x65   : > { %v535_v57 = vmul.f32 %v505_v49, %v475_v19  ;;  %v545_v58 = vmul.f32 %v515_v50, %v475_v19  ;;  %v353_v46 = vsub.f32 %v293_v21, %v323_v43  ;;  %v442_v27 = vmin.f32 %v382_v48, %v412_v55 }
  0x66   : > { %v555_v62 = vadd.f32 %v525_v54, %v351_v59  ;;  %v452_v63 = vmin.f32 %v392_v34, %v422_v56  ;;  %v462_v4 = vmin.f32 %v402_v51, %v432_v60  ;;  %v363_v9 = vsub.f32 %v303_v25, %v333_v38  ;;  %654 = vst [vmem:[%s1290_s22 + $0x28] sm:$0xff] %v624_v53 }
  0x67   : > { %v565_v0 = vadd.f32 %v535_v57, %v361_v10  ;;  %v575_v3 = vadd.f32 %v545_v58, %v371_v11  ;;  %v496_v1 = vsub.f32 %v442_v27, %v352_v20  ;;  %v373_v14 = vsub.f32 %v313_v39, %v343_v61 }
  0x68   : > { %v585_v5 = vmul.f32 %v555_v62, %v555_v62  ;;  %v506_v2 = vsub.f32 %v452_v63, %v362_v42  ;;  %v516_v18 = vsub.f32 %v462_v4, %v372_v47  ;;  %v383_v19 = vand.u32 2147483647, %v353_v46 }
  0x69   : > { %v595_v15 = vmul.f32 %v565_v0, %v565_v0  ;;  %v605_v17 = vmul.f32 %v575_v3, %v575_v3  ;;  %v526_v59 = vmul.f32 %v496_v1, %v476_v52  ;;  %v393_v10 = vand.u32 2147483647, %v363_v9 }
  0x6a   : > { %v536_v6 = vmul.f32 %v506_v2, %v476_v52  ;;  %v403_v11 = vand.u32 2147483647, %v373_v14  ;;  %v546_v24 = vmul.f32 %v516_v18, %v476_v52  ;;  %v413_v28 = vsub.f32 180.0, %v383_v19 }
  0x6b   : > { %v615_v23 = vadd.f32 %v595_v15, %v585_v5  ;;  %v477_v29 = vperm.slane %v466_v12, 0  ;;  %v556_v30 = vadd.f32 %v526_v59, %v352_v20  ;;  %v423_v35 = vsub.f32 180.0, %v393_v10 }
  0x6c   : > { %v566_v32 = vadd.f32 %v536_v6, %v362_v42  ;;  %v433_v16 = vsub.f32 180.0, %v403_v11  ;;  %v576_v40 = vadd.f32 %v546_v24, %v372_v47  ;;  %v443_v13 = vmin.f32 %v383_v19, %v413_v28 }
  0x6d   : > { %v625_v37 = vadd.f32 %v615_v23, %v605_v17  ;;  %v354_v26 = vsub.f32 %v294_v7, %v324_v8  ;;  %v586_v45 = vmul.f32 %v556_v30, %v556_v30  ;;  %v453_v33 = vmin.f32 %v393_v10, %v423_v35 }
  0x6e   : > { %v596_v21 = vmul.f32 %v566_v32, %v566_v32  ;;  %v463_v31 = vmin.f32 %v403_v11, %v433_v16  ;;  %v606_v48 = vmul.f32 %v576_v40, %v576_v40  ;;  %v497_v34 = vsub.f32 %v443_v13, %v353_v46 }
  0x6f   : > { %v364_v43 = vsub.f32 %v304_v22, %v334_v36  ;;  %v507_v42 = vsub.f32 %v453_v33, %v363_v9  ;;  %v374_v50 = vsub.f32 %v314_v41, %v344_v44  ;;  %655 = vst [vmem:[%s1290_s22 + $0x30] sm:$0xff] %v625_v37  ;;  %v384_v52 = vand.u32 2147483647, %v354_v26 }
  0x70   : > { %v616_v20 = vadd.f32 %v596_v21, %v586_v45  ;;  %v517_v49 = vsub.f32 %v463_v31, %v373_v14  ;;  %v527_v51 = vmul.f32 %v497_v34, %v477_v29  ;;  %v478_v63 = vperm.slane %v466_v12, 1 }
  0x71   : > { %v394_v47 = vand.u32 2147483647, %v364_v43  ;;  %v537_v54 = vmul.f32 %v507_v42, %v477_v29  ;;  %v404_v56 = vand.u32 2147483647, %v374_v50  ;;  %v414_v38 = vsub.f32 180.0, %v384_v52 }
  0x72   : > { %v626_v53 = vadd.f32 %v616_v20, %v606_v48  ;;  %v547_v55 = vmul.f32 %v517_v49, %v477_v29  ;;  %v557_v25 = vadd.f32 %v527_v51, %v353_v46 }
  0x73   : > { %v424_v57 = vsub.f32 180.0, %v394_v47  ;;  %v567_v58 = vadd.f32 %v537_v54, %v363_v9  ;;  %v434_v39 = vsub.f32 180.0, %v404_v56  ;;  %v444_v62 = vmin.f32 %v384_v52, %v414_v38 }
  0x74   : > { %v577_v60 = vadd.f32 %v547_v55, %v373_v14  ;;  %v587_v61 = vmul.f32 %v557_v25, %v557_v25  ;;  %656 = vst [vmem:[%s1290_s22 + $0x38] sm:$0xff] %v626_v53 }
  0x75   : > { %v454_v27 = vmin.f32 %v394_v47, %v424_v57  ;;  %v597_v0 = vmul.f32 %v567_v58, %v567_v58  ;;  %v464_v4 = vmin.f32 %v404_v56, %v434_v39  ;;  %v498_v5 = vsub.f32 %v444_v62, %v354_v26 }
  0x76   : > { %v607_v3 = vmul.f32 %v577_v60, %v577_v60 }
  0x77   : > { %v508_v1 = vsub.f32 %v454_v27, %v364_v43  ;;  %v617_v2 = vadd.f32 %v597_v0, %v587_v61  ;;  %v518_v46 = vsub.f32 %v464_v4, %v374_v50  ;;  %v528_v15 = vmul.f32 %v498_v5, %v478_v63 }
  0x79   : > { %v538_v17 = vmul.f32 %v508_v1, %v478_v63  ;;  %v627_v9 = vadd.f32 %v617_v2, %v607_v3  ;;  %v548_v14 = vmul.f32 %v518_v46, %v478_v63  ;;  %v558_v18 = vadd.f32 %v528_v15, %v354_v26 }
  0x7b   : > { %v568_v19 = vadd.f32 %v538_v17, %v364_v43  ;;  %v578_v12 = vadd.f32 %v548_v14, %v374_v50  ;;  %v588_v59 = vmul.f32 %v558_v18, %v558_v18  ;;  %657 = vst [vmem:[%s1290_s22 + $0x40] sm:$0xff] %v627_v9 }
  0x7d   : > { %v598_v6 = vmul.f32 %v568_v19, %v568_v19  ;;  %v608_v10 = vmul.f32 %v578_v12, %v578_v12 }
  0x7f   : > { %v618_v11 = vadd.f32 %v598_v6, %v588_v59 }
  0x81   : > { %v628_v7 = vadd.f32 %v618_v11, %v608_v10 }
  0x83   : > { %658 = vst [vmem:[%s1290_s22 + $0x48] sm:$0xff] %v628_v7 }
  0x84   : > { %1007 = shalt.err (!%p1004_p1)
}
  0x85   : > { %815 = dma.vmem_to_hbm [thread:$0]  (%p1147_p8), %s674_s25, 1280, %s676_s26, %s660_s15  }
  0x86 PF: > { %s687_s6 = sand.u32 1, %s1050_s12   ;;  %p829_p2 = pnand %p792_p13, %p1151_p9 }
  0x87   : > { %s688_s11 = scalar_lea.sflag [#allocation4], %s687_s6 }
  0x88   : > { %p830_p4 = pneg %p829_p2 }
  0x8a   : > { %1045 = dma.done.wait (%p830_p4), %s688_s11, 1280  }
  0x8b   : > { %1047 = vsyncadd (%p830_p4), %s688_s11, 4294966016  ;;  %s22_s17 = sadd.s32 1, %s1070_s17   ;;  %s1416_s16 = sld [smem:[#allocation13_spill]] }
  0x8c   : > { %p19_p6 = scmp.ge.s32.totalorder %s22_s17, 4   ;;  %s1417_s14 = sld [smem:[#allocation16_spill]] }
  0x8d   : > { %s1418_s15 = sld [smem:[#allocation14_spill]]  ;;  %s1420_s12 = smov %s1054_s13 }
  0x8e   : > { %s1419_s23 = sld [smem:[#allocation15_spill]] }
  0x90   :  { %21 = sbr.rel (!%p19_p6) target bundleno = 10 (0xa), region = 98 }
  0x91   : > { %s1421_s13 = smov %s1416_s16 }
  0x94   : > { %s1422_s16 = smov %s1419_s23 }
  0x95   :  { %694 = vsyncpa [#allocation3], 1 }
  0x96   :  { %696 = vsyncpa [#allocation3 + $0x1], 1 }
  0x97   :  { %697 = vsyncpa [#allocation6], 1 }
  0x98   :  { %699 = vsyncpa [#allocation6 + $0x1], 1 }
  0x99   :  { %700 = vsyncpa [#allocation4], 1 }
  0x9a   :  { %702 = vsyncpa [#allocation4 + $0x1], 1 }

</bundles_post_ra>
